<compile_context>
chip_gen: v7x
topology: tpu7x:2x2x1
jax: 0.10.0
libtpu: 0.0.40
codegen_flags: <defaults>
</compile_context>

<pallas_src>
import jax
import jax.numpy as jnp
from jax.experimental import pallas as pl
from jax.experimental.pallas import tpu as pltpu


def _round_up(n, m):
    return ((n + m - 1) // m) * m


def _swiglu_kernel(x_ref, w1_ref, w2_ref, w3_ref, o_ref):
    # x_ref: (TM, D); w1_ref/w2_ref: (D, H); w3_ref: (H, D); o_ref: (TM, D)
    x = x_ref[...]
    gate = jnp.dot(x, w1_ref[...], preferred_element_type=jnp.float32)
    up = jnp.dot(x, w2_ref[...], preferred_element_type=jnp.float32)
    # Swish / SiLU: g * sigmoid(g); exp goes to the EUP, mul/div to the VPU.
    sig = 1.0 / (1.0 + jnp.exp(-gate))
    hidden = gate * sig * up
    out = jnp.dot(hidden.astype(w3_ref.dtype), w3_ref[...],
                  preferred_element_type=jnp.float32)
    o_ref[...] = out.astype(o_ref.dtype)


def swiglu_expert_moe(x, w1, w2, w3, *, tm=256):
    """Fused SwiGLU expert forward: (silu(x @ w1) * (x @ w2)) @ w3.

    x : (..., D);  w1, w2 : (D, H);  w3 : (H, D)  with H = 2*D.
    (Torch nn.Linear weights transposed so y = x @ W.)
    """
    orig_shape = x.shape
    D = orig_shape[-1]
    H = w1.shape[1]
    assert w1.shape == (D, H) and w2.shape == (D, H) and w3.shape == (H, D)
    # D and H are multiples of 128 in all ModelArgs configs -> lane-dense
    # blocks / unmasked stores. (Full-axis blocks stay legal regardless.)

    x2 = x.reshape(-1, D)
    R = x2.shape[0]

    # Row tile: multiple of 8 sublanes (f32) / 16 (bf16), as large as the VMEM
    # budget allows; shrink for tiny inputs and pad rows to a tile multiple
    # instead of asserting divisibility.
    sub = 16 if x.dtype == jnp.bfloat16 else 8
    tm_eff = max(sub, min(_round_up(tm, sub), _round_up(R, sub)))
    R_pad = _round_up(R, tm_eff)
    if R_pad != R:
        x2 = jnp.pad(x2, ((0, R_pad - R), (0, 0)))

    # VMEM budget: double-buffered x/out tiles + resident weights + f32
    # intermediates (gate, up, hidden), with headroom. Capped well below
    # v7x's 64 MiB per-core VMEM.
    itm = x2.dtype.itemsize
    witm = w1.dtype.itemsize
    need = (4 * tm_eff * D * itm                  # x + out tiles, double-buffered
            + 2 * (2 * D * H + H * D) * witm      # weights (conservative x2)
            + 4 * tm_eff * H * 4)                 # f32 intermediates
    vmem_limit = min(max(int(need * 1.5), 32 << 20), 56 << 20)

    out = pl.pallas_call(
        _swiglu_kernel,
        out_shape=jax.ShapeDtypeStruct((R_pad, D), x.dtype),
        grid_spec=pltpu.PrefetchScalarGridSpec(
            num_scalar_prefetch=0,
            grid=(R_pad // tm_eff,),
            in_specs=[
                pl.BlockSpec((tm_eff, D), lambda i: (i, 0)),  # x row tile
                pl.BlockSpec((D, H), lambda i: (0, 0)),       # w1 (resident)
                pl.BlockSpec((D, H), lambda i: (0, 0)),       # w2 (resident)
                pl.BlockSpec((H, D), lambda i: (0, 0)),       # w3 (resident)
            ],
            out_specs=pl.BlockSpec((tm_eff, D), lambda i: (i, 0)),
        ),
        compiler_params=pltpu.CompilerParams(
            dimension_semantics=("parallel",),   # row tiles shard across TCs (v7x)
            vmem_limit_bytes=vmem_limit,
        ),
    )(x2, w1, w2, w3)

    if R_pad != R:
        out = out[:R]
    return out.reshape(orig_shape)


if __name__ == "__main__":
    # Small shapes consistent with the module: (batch, seq, embeddings_dims),
    # hidden = 2 * embeddings_dims.
    B, S, D = 2, 8, 128
    H = 2 * D

    key = jax.random.PRNGKey(0)
    kx, k1, k2, k3 = jax.random.split(key, 4)
    x = jax.random.normal(kx, (B, S, D), dtype=jnp.float32)
    # nn.Linear(bias=False)-style weights, stored transposed: y = x @ W.
    w1 = jax.random.normal(k1, (D, H), dtype=jnp.float32) / (D ** 0.5)
    w2 = jax.random.normal(k2, (D, H), dtype=jnp.float32) / (D ** 0.5)
    w3 = jax.random.normal(k3, (H, D), dtype=jnp.float32) / (H ** 0.5)

    y = swiglu_expert_moe(x, w1, w2, w3)
    y = jax.block_until_ready(y)

    # Pure-JAX reference (same math as the torch module's forward).
    gate = x @ w1
    ref = (gate * jax.nn.sigmoid(gate) * (x @ w2)) @ w3
    assert jnp.allclose(y, ref, atol=2e-3, rtol=2e-3), "mismatch vs reference"

    print("KERNEL_OK")
</pallas_src>

<mosaic_0001>
module attributes {stable_mosaic.version = 11 : i64} {
  func.func @_swiglu_kernel(%arg0: i32, %arg1: memref<16x128xf32, #tpu.memory_space<vmem>>, %arg2: memref<128x256xf32, #tpu.memory_space<vmem>>, %arg3: memref<128x256xf32, #tpu.memory_space<vmem>>, %arg4: memref<256x128xf32, #tpu.memory_space<vmem>>, %arg5: memref<16x128xf32, #tpu.memory_space<vmem>>) attributes {dimension_semantics = [#tpu.dimension_semantics<parallel>], iteration_bounds = array<i64: 1>, scalar_prefetch = 0 : i64, scratch_operands = 0 : i64, tpu.core_type = #tpu.core_type<tc>, window_params = [{transform_indices = @transform_0, window_bounds = array<i64: 16, 128>}, {pipeline_mode = #tpu.pipeline_mode<synchronous>, transform_indices = @transform_1, window_bounds = array<i64: 128, 256>}, {pipeline_mode = #tpu.pipeline_mode<synchronous>, transform_indices = @transform_2, window_bounds = array<i64: 128, 256>}, {pipeline_mode = #tpu.pipeline_mode<synchronous>, transform_indices = @transform_3, window_bounds = array<i64: 256, 128>}, {transform_indices = @transform_4, window_bounds = array<i64: 16, 128>}]} {
    %c0 = arith.constant 0 : index
    %c0_0 = arith.constant 0 : index
    %0 = vector.load %arg1[%c0, %c0_0] : memref<16x128xf32, #tpu.memory_space<vmem>>, vector<16x128xf32>
    %c0_1 = arith.constant 0 : index
    %c0_2 = arith.constant 0 : index
    %1 = vector.load %arg2[%c0_1, %c0_2] : memref<128x256xf32, #tpu.memory_space<vmem>>, vector<128x256xf32>
    %cst = arith.constant dense<0.000000e+00> : vector<16x256xf32>
    %2 = tpu.matmul %0, %1, %cst {dimension_numbers = #tpu.dot_dimension_numbers<[1], [0], [0], [1], [0, 0, 1, 1], [], []>} : vector<16x128xf32>, vector<128x256xf32>, vector<16x256xf32> -> vector<16x256xf32>
    %c0_3 = arith.constant 0 : index
    %c0_4 = arith.constant 0 : index
    %3 = vector.load %arg3[%c0_3, %c0_4] : memref<128x256xf32, #tpu.memory_space<vmem>>, vector<128x256xf32>
    %cst_5 = arith.constant dense<0.000000e+00> : vector<16x256xf32>
    %4 = tpu.matmul %0, %3, %cst_5 {dimension_numbers = #tpu.dot_dimension_numbers<[1], [0], [0], [1], [0, 0, 1, 1], [], []>} : vector<16x128xf32>, vector<128x256xf32>, vector<16x256xf32> -> vector<16x256xf32>
    %cst_6 = arith.constant 0.000000e+00 : f32
    %5 = vector.broadcast %cst_6 : f32 to vector<16x256xf32>
    %6 = arith.subf %5, %2 : vector<16x256xf32>
    %7 = math.exp %6 : vector<16x256xf32>
    %cst_7 = arith.constant 1.000000e+00 : f32
    %8 = vector.broadcast %cst_7 : f32 to vector<16x256xf32>
    %9 = arith.addf %8, %7 : vector<16x256xf32>
    %cst_8 = arith.constant 1.000000e+00 : f32
    %10 = vector.broadcast %cst_8 : f32 to vector<16x256xf32>
    %11 = arith.divf %10, %9 : vector<16x256xf32>
    %12 = arith.mulf %2, %11 : vector<16x256xf32>
    %13 = arith.mulf %12, %4 : vector<16x256xf32>
    %c0_9 = arith.constant 0 : index
    %c0_10 = arith.constant 0 : index
    %14 = vector.load %arg4[%c0_9, %c0_10] : memref<256x128xf32, #tpu.memory_space<vmem>>, vector<256x128xf32>
    %cst_11 = arith.constant dense<0.000000e+00> : vector<16x128xf32>
    %15 = tpu.matmul %13, %14, %cst_11 {dimension_numbers = #tpu.dot_dimension_numbers<[1], [0], [0], [1], [0, 0, 1, 1], [], []>} : vector<16x256xf32>, vector<256x128xf32>, vector<16x128xf32> -> vector<16x128xf32>
    %c0_12 = arith.constant 0 : index
    %c0_13 = arith.constant 0 : index
    %16 = vector.load %arg5[%c0_12, %c0_13] : memref<16x128xf32, #tpu.memory_space<vmem>>, vector<16x128xf32>
    tpu.vector_store %arg5[%c0_12, %c0_13], %15 {strides = array<i32>} : memref<16x128xf32, #tpu.memory_space<vmem>>, vector<16x128xf32>,
    return
  }
  func.func @transform_0(%arg0: i32) -> (i32, i32) {
    %c0_i32 = arith.constant 0 : i32
    %c0_i32_0 = arith.constant 0 : i32
    return %arg0, %c0_i32 : i32, i32
  }
  func.func @transform_1(%arg0: i32) -> (i32, i32) {
    %c0_i32 = arith.constant 0 : i32
    %c0_i32_0 = arith.constant 0 : i32
    %c0_i32_1 = arith.constant 0 : i32
    return %c0_i32, %c0_i32_0 : i32, i32
  }
  func.func @transform_2(%arg0: i32) -> (i32, i32) {
    %c0_i32 = arith.constant 0 : i32
    %c0_i32_0 = arith.constant 0 : i32
    %c0_i32_1 = arith.constant 0 : i32
    return %c0_i32, %c0_i32_0 : i32, i32
  }
  func.func @transform_3(%arg0: i32) -> (i32, i32) {
    %c0_i32 = arith.constant 0 : i32
    %c0_i32_0 = arith.constant 0 : i32
    %c0_i32_1 = arith.constant 0 : i32
    return %c0_i32, %c0_i32_0 : i32, i32
  }
  func.func @transform_4(%arg0: i32) -> (i32, i32) {
    %c0_i32 = arith.constant 0 : i32
    %c0_i32_0 = arith.constant 0 : i32
    return %arg0, %c0_i32 : i32, i32
  }
}

</mosaic_0001>

<bundles_post_ra>
// kernel: tpu_custom_call.1
= control target key start
LH: loop header
LB: loop body
LE: loop exit
PB: predicated region body
PF: predicated region fallthrough
CT: control target
= control target key end

     0   :  { %9 = vsyncpa [#allocation3], 0  ;;  %s868_s0 = inlined_call_operand.hbm [shape: f32[16,128], index: 0, kind: input, shape index: {}]   ;;  %s869_s1 = inlined_call_operand.hbm [shape: f32[128,256], index: 1, kind: input, shape index: {}]   ;;  %s870_s2 = inlined_call_operand.hbm [shape: f32[128,256], index: 2, kind: input, shape index: {}]   ;;  %s871_s3 = inlined_call_operand.hbm [shape: f32[256,128], index: 3, kind: input, shape index: {}]   ;;  %s872_s4 = inlined_call_operand.hbm [shape: f32[16,128], index: 4, kind: output, shape index: {}]  }
   0x1   :  { %10 = vsyncpa [#allocation6], 0 }
   0x2   :  { %11 = vsyncpa [#allocation9], 0 }
   0x3   :  { %12 = vsyncpa [#allocation4], 0  ;;  %s747_s15 = smov [#allocation5]   ;;  %s629_s19 = scalar_lea.hbm %s869_s1, 4096 }
   0x4   :  { %s30_s16 = sshll.u32 %s747_s15, 4  ;;  %p630_p0 = scmp.ne.s32.totalorder %s869_s1, %s629_s19  ;;  %s31_s16 = int_to_ptr.vmem [resolvable:$true] %s30_s16 }
   0x5   :  { %p633_p1 = scmp.lt.u32.totalorder %s629_s19, %s869_s1 }
   0x7   :  { %p635_p2 = pnand %p633_p1, %p630_p0 }
   0x9   :  { %638 = shalt.err (!%p635_p2)
}
   0xa   :  { %s639_s24 = scalar_lea.vmem %s31_s16, 4096  ;;  %p644_p4 = scmp.lt.s32.totalorder %s31_s16, %s31_s16 }
   0xb   :  { %p640_p3 = scmp.ne.s32.totalorder %s31_s16, %s639_s24  ;;  %p645_p5 = scmp.lt.s32.totalorder %s639_s24, %s639_s24 }
   0xd   :  { %p646_p6 = por %p645_p5, %p644_p4 }
   0xf   :  { %p647_p7 = pnand %p646_p6, %p640_p3 }
  0x11   :  { %650 = shalt.err (!%p647_p7)
}
  0x12   :  { %s748_s25 = smov 256   ;;  %s749_s26 = smov 16  }
  0x13   :  { %36 = dma.hbm_to_vmem [thread:$0]  %s869_s1, 4096, %s31_s16, [#allocation6], %s748_s25, %s748_s25, %s749_s26  }
  0x14   :  { %s750_s29 = smov [#allocation2]   ;;  %s651_s7 = scalar_lea.hbm %s868_s0, 256 }
  0x15   :  { %s18_s30 = sshll.u32 %s750_s29, 4  ;;  %p652_p8 = scmp.ne.s32.totalorder %s868_s0, %s651_s7  ;;  %s19_s30 = int_to_ptr.vmem [resolvable:$true] %s18_s30 }
  0x16   :  { %p655_p9 = scmp.lt.u32.totalorder %s651_s7, %s868_s0 }
  0x18   :  { %p657_p10 = pnand %p655_p9, %p652_p8 }
  0x1a   :  { %660 = shalt.err (!%p657_p10)
}
  0x1b   :  { %s661_s12 = scalar_lea.vmem %s19_s30, 256  ;;  %p666_p12 = scmp.lt.s32.totalorder %s19_s30, %s19_s30 }
  0x1c   :  { %p662_p11 = scmp.ne.s32.totalorder %s19_s30, %s661_s12  ;;  %p667_p13 = scmp.lt.s32.totalorder %s661_s12, %s661_s12 }
  0x1e   :  { %p668_p0 = por %p667_p13, %p666_p12 }
  0x20   :  { %p669_p1 = pnand %p668_p0, %p662_p11 }
  0x22   :  { %672 = shalt.err (!%p669_p1)
}
  0x23   :  { %s751_s1 = smov 128   ;;  %s752_s13 = smov 8  }
  0x24   :  { %24 = dma.hbm_to_vmem [thread:$0]  %s868_s0, 256, %s19_s30, [#allocation3], %s751_s1, %s751_s1, %s752_s13  }
  0x25   :  { %s753_s16 = smov [#allocation7]   ;;  %s754_s18 = smov [#allocation8]  }
  0x26   :  { %s42_s17 = sshll.u32 %s753_s16, 4  ;;  %s54_s19 = sshll.u32 %s754_s18, 4  ;;  %s43_s17 = int_to_ptr.vmem [resolvable:$true] %s42_s17  ;;  %s812_s19 = int_to_ptr.vmem [resolvable:$true] %s54_s19 }
  0x27   :  { %s673_s22 = scalar_lea.hbm %s870_s2, 4096 }
  0x28   :  { %p674_p2 = scmp.ne.s32.totalorder %s870_s2, %s673_s22  ;;  %p677_p3 = scmp.lt.u32.totalorder %s673_s22, %s870_s2 }
  0x2a   :  { %p679_p4 = pnand %p677_p3, %p674_p2 }
  0x2c   :  { %682 = shalt.err (!%p679_p4)
}
  0x2d   :  { %s683_s0 = scalar_lea.vmem %s43_s17, 4096  ;;  %p688_p6 = scmp.lt.s32.totalorder %s43_s17, %s43_s17 }
  0x2e   :  { %p684_p5 = scmp.ne.s32.totalorder %s43_s17, %s683_s0  ;;  %p689_p7 = scmp.lt.s32.totalorder %s683_s0, %s683_s0 }
  0x30   :  { %p690_p8 = por %p689_p7, %p688_p6 }
  0x32   :  { %p691_p9 = pnand %p690_p8, %p684_p5 }
  0x34   :  { %694 = shalt.err (!%p691_p9)
}
  0x35   :  { %48 = dma.hbm_to_vmem [thread:$0]  %s870_s2, 4096, %s43_s17, [#allocation6], %s748_s25, %s748_s25, %s749_s26  }
  0x36   :  { %s695_s7 = scalar_lea.hbm %s871_s3, 4096 }
  0x37   :  { %p696_p10 = scmp.ne.s32.totalorder %s871_s3, %s695_s7  ;;  %p699_p11 = scmp.lt.u32.totalorder %s695_s7, %s871_s3 }
  0x39   :  { %p701_p12 = pnand %p699_p11, %p696_p10 }
  0x3b   :  { %704 = shalt.err (!%p701_p12)
}
  0x3c   :  { %s705_s12 = scalar_lea.vmem %s812_s19, 4096  ;;  %p710_p0 = scmp.lt.s32.totalorder %s812_s19, %s812_s19 }
  0x3d   :  { %p706_p13 = scmp.ne.s32.totalorder %s812_s19, %s705_s12  ;;  %p711_p1 = scmp.lt.s32.totalorder %s705_s12, %s705_s12 }
  0x3f   :  { %p712_p2 = por %p711_p1, %p710_p0 }
  0x41   :  { %p713_p3 = pnand %p712_p2, %p706_p13 }
  0x43   :  { %716 = shalt.err (!%p713_p3)
}
  0x44   :  { %60 = dma.hbm_to_vmem [thread:$0]  %s871_s3, 4096, %s812_s19, [#allocation9], %s751_s1, %s751_s1, %s752_s13  }
  0x45   :  { %739 = dma.done.wait [#allocation3], 256  }
  0x46   :  { %740 = vsyncadd [#allocation3], 4294967040 }
  0x47   :  { %741 = dma.done.wait [#allocation6], 8192  }
  0x48   :  { %742 = vsyncadd [#allocation6], 4294959104 }
  0x49   :  { %743 = dma.done.wait [#allocation9], 4096  }
  0x4a   :  { %744 = vsyncadd [#allocation9], 4294963200  ;;  %v755_v0 = vmov 0.0   ;;  %v76_v1 = vld [vmem:[#allocation5 + $0x8] sm:$0xff]  ;;  %v78_v2 = vld [vmem:[#allocation5 + $0x18] sm:$0xff]  ;;  %s756_s3 = smov [#allocation10]  }
  0x4b   :  { %171 = vmatprep.mubr.f32.mxu0 %v755_v0  ;;  %280 = vmatprep.mubr.f32.mxu1 %v755_v0  ;;  %v75_v3 = vld [vmem:[#allocation5] sm:$0xff]  ;;  %v491_v4 = vpack.c.bf16 %v78_v2, %v76_v1  ;;  %v77_v5 = vld [vmem:[#allocation5 + $0x10] sm:$0xff]  ;;  %v80_v6 = vld [vmem:[#allocation5 + $0x28] sm:$0xff]  ;;  %s439_s26 = sshll.u32 %s756_s3, 4  ;;  %s440_s26 = int_to_ptr.vmem [resolvable:$true] %s439_s26 }
  0x4c   :  { %v82_v7 = vld [vmem:[#allocation5 + $0x38] sm:$0xff]  ;;  %v493_v8 = vpack.c.bf16 %v77_v5, %v75_v3  ;;  %v79_v10 = vld [vmem:[#allocation5 + $0x20] sm:$0xff]  ;;  %v81_v11 = vld [vmem:[#allocation5 + $0x30] sm:$0xff]  ;;  %s717_s14 = scalar_lea.vmem %s440_s26, 256  ;;  %p722_p5 = scmp.lt.s32.totalorder %s440_s26, %s440_s26 }
  0x4d   :  { %v495_v9 = vpack.c.bf16 %v82_v7, %v80_v6  ;;  %v84_v12 = vld [vmem:[#allocation5 + $0x48] sm:$0xff]  ;;  %492 = vmatprep.subr.bf16.mxu0 %v491_v4  ;;  %v86_v13 = vld [vmem:[#allocation5 + $0x58] sm:$0xff]  ;;  %v497_v14 = vpack.c.bf16 %v81_v11, %v79_v10  ;;  %v83_v16 = vld [vmem:[#allocation5 + $0x40] sm:$0xff]  ;;  %p718_p4 = scmp.ne.s32.totalorder %s440_s26, %s717_s14  ;;  %p723_p6 = scmp.lt.s32.totalorder %s717_s14, %s717_s14 }
  0x4e   :  { %494 = vmatpush1.bf16.msra.mxu0 %v493_v8  ;;  %v499_v15 = vpack.c.bf16 %v86_v13, %v84_v12  ;;  %v85_v17 = vld [vmem:[#allocation5 + $0x50] sm:$0xff]  ;;  %v88_v18 = vld [vmem:[#allocation5 + $0x68] sm:$0xff]  ;;  %v90_v19 = vld [vmem:[#allocation5 + $0x78] sm:$0xff] }
  0x4f   :  { %496 = vmatprep.subr.bf16.mxu0 %v495_v9  ;;  %v501_v20 = vpack.c.bf16 %v85_v17, %v83_v16  ;;  %v503_v21 = vpack.c.bf16 %v90_v19, %v88_v18  ;;  %v87_v22 = vld [vmem:[#allocation5 + $0x60] sm:$0xff]  ;;  %v89_v23 = vld [vmem:[#allocation5 + $0x70] sm:$0xff]  ;;  %v92_v24 = vld [vmem:[#allocation5 + $0x88] sm:$0xff]  ;;  %p724_p7 = por %p723_p6, %p722_p5 }
  0x50   :  { %v94_v25 = vld [vmem:[#allocation5 + $0x98] sm:$0xff]  ;;  %v185_v26 = vld [vmem:[#allocation7 + $0x8] sm:$0xff]  ;;  %v91_v27 = vld [vmem:[#allocation5 + $0x80] sm:$0xff]  ;;  %v505_v31 = vpack.c.bf16 %v89_v23, %v87_v22 }
  0x51   :  { %v187_v28 = vld [vmem:[#allocation7 + $0x18] sm:$0xff]  ;;  %v184_v29 = vld [vmem:[#allocation7] sm:$0xff]  ;;  %v186_v30 = vld [vmem:[#allocation7 + $0x10] sm:$0xff]  ;;  %v507_v37 = vpack.c.bf16 %v94_v25, %v92_v24  ;;  %p725_p8 = pnand %p724_p7, %p718_p4 }
  0x52   :  { %498 = vmatpush1.bf16.msra.mxu0 %v497_v14  ;;  %v93_v32 = vld [vmem:[#allocation5 + $0x90] sm:$0xff]  ;;  %v523_v33 = vpack.c.bf16 %v187_v28, %v185_v26  ;;  %v525_v34 = vpack.c.bf16 %v186_v30, %v184_v29  ;;  %v189_v35 = vld [vmem:[#allocation7 + $0x28] sm:$0xff]  ;;  %v191_v36 = vld [vmem:[#allocation7 + $0x38] sm:$0xff] }
  0x53   :  { %500 = vmatprep.subr.bf16.mxu0 %v499_v15  ;;  %v96_v38 = vld [vmem:[#allocation5 + $0xa8] sm:$0xff]  ;;  %v527_v39 = vpack.c.bf16 %v191_v36, %v189_v35  ;;  %v188_v40 = vld [vmem:[#allocation7 + $0x20] sm:$0xff]  ;;  %v190_v41 = vld [vmem:[#allocation7 + $0x30] sm:$0xff]  ;;  %v509_v46 = vpack.c.bf16 %v93_v32, %v91_v27 }
  0x54   :  { %v98_v42 = vld [vmem:[#allocation5 + $0xb8] sm:$0xff]  ;;  %524 = vmatprep.subr.bf16.mxu1 %v523_v33  ;;  %v193_v43 = vld [vmem:[#allocation7 + $0x48] sm:$0xff]  ;;  %v529_v45 = vpack.c.bf16 %v190_v41, %v188_v40  ;;  %v95_v47 = vld [vmem:[#allocation5 + $0xa0] sm:$0xff] }
  0x55   :  { %v195_v44 = vld [vmem:[#allocation7 + $0x58] sm:$0xff]  ;;  %526 = vmatpush1.bf16.msra.mxu1 %v525_v34  ;;  %v192_v49 = vld [vmem:[#allocation7 + $0x40] sm:$0xff]  ;;  %v194_v50 = vld [vmem:[#allocation7 + $0x50] sm:$0xff]  ;;  %v511_v51 = vpack.c.bf16 %v98_v42, %v96_v38 }
  0x56   :  { %502 = vmatpush1.bf16.msra.mxu0 %v501_v20  ;;  %528 = vmatprep.subr.bf16.mxu1 %v527_v39  ;;  %v531_v48 = vpack.c.bf16 %v195_v44, %v193_v43  ;;  %v97_v52 = vld [vmem:[#allocation5 + $0xb0] sm:$0xff]  ;;  %v197_v53 = vld [vmem:[#allocation7 + $0x68] sm:$0xff]  ;;  %v199_v54 = vld [vmem:[#allocation7 + $0x78] sm:$0xff]  ;;  %v533_v57 = vpack.c.bf16 %v194_v50, %v192_v49 }
  0x57   :  { %504 = vmatprep.subr.bf16.mxu0 %v503_v21  ;;  %v100_v55 = vld [vmem:[#allocation5 + $0xc8] sm:$0xff]  ;;  %v102_v56 = vld [vmem:[#allocation5 + $0xd8] sm:$0xff]  ;;  %v513_v58 = vpack.c.bf16 %v97_v52, %v95_v47  ;;  %v99_v59 = vld [vmem:[#allocation5 + $0xc0] sm:$0xff]  ;;  %v535_v60 = vpack.c.bf16 %v199_v54, %v197_v53 }
  0x58   :  { %v196_v61 = vld [vmem:[#allocation7 + $0x60] sm:$0xff]  ;;  %v198_v62 = vld [vmem:[#allocation7 + $0x70] sm:$0xff]  ;;  %v515_v63 = vpack.c.bf16 %v102_v56, %v100_v55  ;;  %v201_v2 = vld [vmem:[#allocation7 + $0x88] sm:$0xff] }
  0x59   :  { %530 = vmatpush1.bf16.msra.mxu1 %v529_v45  ;;  %v101_v1 = vld [vmem:[#allocation5 + $0xd0] sm:$0xff]  ;;  %v203_v3 = vld [vmem:[#allocation7 + $0x98] sm:$0xff]  ;;  %v104_v4 = vld [vmem:[#allocation5 + $0xe8] sm:$0xff]  ;;  %v537_v6 = vpack.c.bf16 %v198_v62, %v196_v61 }
  0x5a   :  { %506 = vmatpush1.bf16.msra.mxu0 %v505_v31  ;;  %532 = vmatprep.subr.bf16.mxu1 %v531_v48  ;;  %v106_v5 = vld [vmem:[#allocation5 + $0xf8] sm:$0xff]  ;;  %v517_v7 = vpack.c.bf16 %v101_v1, %v99_v59  ;;  %v103_v8 = vld [vmem:[#allocation5 + $0xe0] sm:$0xff]  ;;  %v539_v9 = vpack.c.bf16 %v203_v3, %v201_v2  ;;  %v202_v11 = vld [vmem:[#allocation7 + $0x90] sm:$0xff] }
  0x5b   :  { %508 = vmatprep.subr.bf16.mxu0 %v507_v37  ;;  %v200_v10 = vld [vmem:[#allocation7 + $0x80] sm:$0xff]  ;;  %v519_v12 = vpack.c.bf16 %v106_v5, %v104_v4  ;;  %v105_v13 = vld [vmem:[#allocation5 + $0xf0] sm:$0xff]  ;;  %v205_v14 = vld [vmem:[#allocation7 + $0xa8] sm:$0xff] }
  0x5c   :  { %v207_v15 = vld [vmem:[#allocation7 + $0xb8] sm:$0xff]  ;;  %v541_v16 = vpack.c.bf16 %v202_v11, %v200_v10  ;;  %v521_v17 = vpack.c.bf16 %v105_v13, %v103_v8  ;;  %v204_v19 = vld [vmem:[#allocation7 + $0xa0] sm:$0xff]  ;;  %v206_v20 = vld [vmem:[#allocation7 + $0xb0] sm:$0xff] }
  0x5d   :  { %534 = vmatpush1.bf16.msra.mxu1 %v533_v57  ;;  %v543_v18 = vpack.c.bf16 %v207_v15, %v205_v14  ;;  %v209_v21 = vld [vmem:[#allocation7 + $0xc8] sm:$0xff]  ;;  %v211_v22 = vld [vmem:[#allocation7 + $0xd8] sm:$0xff]  ;;  %v545_v23 = vpack.c.bf16 %v206_v20, %v204_v19  ;;  %v73_v24 = vld [vmem:[#allocation2] sm:$0xff] }
  0x5e   :  { %510 = vmatpush1.bf16.msra.mxu0 %v509_v46  ;;  %536 = vmatprep.subr.bf16.mxu1 %v535_v60  ;;  %v547_v25 = vpack.c.bf16 %v211_v22, %v209_v21  ;;  %v208_v26 = vld [vmem:[#allocation7 + $0xc0] sm:$0xff]  ;;  %v210_v27 = vld [vmem:[#allocation7 + $0xd0] sm:$0xff]  ;;  %v213_v28 = vld [vmem:[#allocation7 + $0xe8] sm:$0xff] }
  0x5f   :  { %512 = vmatprep.subr.bf16.mxu0 %v511_v51  ;;  %v215_v29 = vld [vmem:[#allocation7 + $0xf8] sm:$0xff]  ;;  %v549_v30 = vpack.c.bf16 %v210_v27, %v208_v26  ;;  %v212_v33 = vld [vmem:[#allocation7 + $0xe0] sm:$0xff]  ;;  %v214_v34 = vld [vmem:[#allocation7 + $0xf0] sm:$0xff] }
  0x60   :  { %v74_v31 = vld [vmem:[#allocation2 + $0x8] sm:$0xff]  ;;  %v551_v32 = vpack.c.bf16 %v215_v29, %v213_v28  ;;  %v553_v35 = vpack.c.bf16 %v214_v34, %v212_v33  ;;  %v341_v36 = vld [vmem:[#allocation8 + $0x80] sm:$0xff]  ;;  %v342_v37 = vld [vmem:[#allocation8 + $0x88] sm:$0xff] }
  0x61   :  { %538 = vmatpush1.bf16.msra.mxu1 %v537_v6  ;;  %v555_v38 = vpack.c.bf16 %v342_v37, %v341_v36  ;;  %v325_v39 = vld [vmem:[#allocation8] sm:$0xff]  ;;  %v326_v40 = vld [vmem:[#allocation8 + $0x8] sm:$0xff]  ;;  %v343_v42 = vld [vmem:[#allocation8 + $0x90] sm:$0xff] }
  0x62   :  { %514 = vmatpush1.bf16.msra.mxu0 %v513_v58  ;;  %540 = vmatprep.subr.bf16.mxu1 %v539_v9  ;;  %v557_v41 = vpack.c.bf16 %v326_v40, %v325_v39  ;;  %v344_v43 = vld [vmem:[#allocation8 + $0x98] sm:$0xff]  ;;  %v327_v45 = vld [vmem:[#allocation8 + $0x10] sm:$0xff]  ;;  %v346_v48 = vld [vmem:[#allocation8 + $0xa8] sm:$0xff] }
  0x63   :  { %516 = vmatprep.subr.bf16.mxu0 %v515_v63  ;;  %v559_v44 = vpack.c.bf16 %v344_v43, %v343_v42  ;;  %v328_v46 = vld [vmem:[#allocation8 + $0x18] sm:$0xff]  ;;  %v329_v50 = vld [vmem:[#allocation8 + $0x20] sm:$0xff]  ;;  %v330_v51 = vld [vmem:[#allocation8 + $0x28] sm:$0xff] }
  0x64   :  { %v561_v47 = vpack.c.bf16 %v328_v46, %v327_v45  ;;  %v565_v52 = vpack.c.bf16 %v330_v51, %v329_v50  ;;  %v347_v53 = vld [vmem:[#allocation8 + $0xb0] sm:$0xff]  ;;  %v348_v54 = vld [vmem:[#allocation8 + $0xb8] sm:$0xff]  ;;  %v349_v59 = vld [vmem:[#allocation8 + $0xc0] sm:$0xff] }
  0x65   :  { %542 = vmatpush1.bf16.msra.mxu1 %v541_v16  ;;  %v567_v55 = vpack.c.bf16 %v348_v54, %v347_v53  ;;  %v331_v56 = vld [vmem:[#allocation8 + $0x30] sm:$0xff]  ;;  %v332_v57 = vld [vmem:[#allocation8 + $0x38] sm:$0xff]  ;;  %v350_v60 = vld [vmem:[#allocation8 + $0xc8] sm:$0xff] }
  0x66   :  { %518 = vmatpush1.bf16.msra.mxu0 %v517_v7  ;;  %544 = vmatprep.subr.bf16.mxu1 %v543_v18  ;;  %v569_v58 = vpack.c.bf16 %v332_v57, %v331_v56  ;;  %v571_v61 = vpack.c.bf16 %v350_v60, %v349_v59  ;;  %v333_v62 = vld [vmem:[#allocation8 + $0x40] sm:$0xff]  ;;  %v334_v63 = vld [vmem:[#allocation8 + $0x48] sm:$0xff]  ;;  %v351_v2 = vld [vmem:[#allocation8 + $0xd0] sm:$0xff] }
  0x67   :  { %520 = vmatprep.subr.bf16.mxu0 %v519_v12  ;;  %v573_v1 = vpack.c.bf16 %v334_v63, %v333_v62  ;;  %v352_v3 = vld [vmem:[#allocation8 + $0xd8] sm:$0xff]  ;;  %v335_v5 = vld [vmem:[#allocation8 + $0x50] sm:$0xff]  ;;  %v353_v8 = vld [vmem:[#allocation8 + $0xe0] sm:$0xff] }
  0x68   :  { %v575_v4 = vpack.c.bf16 %v352_v3, %v351_v2  ;;  %v336_v6 = vld [vmem:[#allocation8 + $0x58] sm:$0xff]  ;;  %v354_v9 = vld [vmem:[#allocation8 + $0xe8] sm:$0xff]  ;;  %v337_v11 = vld [vmem:[#allocation8 + $0x60] sm:$0xff] }
  0x69   :  { %546 = vmatpush1.bf16.msra.mxu1 %v545_v23  ;;  %v577_v7 = vpack.c.bf16 %v336_v6, %v335_v5  ;;  %v579_v10 = vpack.c.bf16 %v354_v9, %v353_v8  ;;  %v338_v12 = vld [vmem:[#allocation8 + $0x68] sm:$0xff]  ;;  %v355_v14 = vld [vmem:[#allocation8 + $0xf0] sm:$0xff]  ;;  %v356_v15 = vld [vmem:[#allocation8 + $0xf8] sm:$0xff] }
  0x6a   :  { %522 = vmatpush1.bf16.msra.mxu0 %v521_v17  ;;  %548 = vmatprep.subr.bf16.mxu1 %v547_v25  ;;  %v581_v13 = vpack.c.bf16 %v338_v12, %v337_v11  ;;  %v583_v16 = vpack.c.bf16 %v356_v15, %v355_v14  ;;  %v339_v17 = vld [vmem:[#allocation8 + $0x70] sm:$0xff]  ;;  %v340_v18 = vld [vmem:[#allocation8 + $0x78] sm:$0xff] }
  0x6b   :  { %556 = vmatprep.subr.bf16.mxu0 %v555_v38  ;;  %v585_v19 = vpack.c.bf16 %v340_v18, %v339_v17 }
  0x6d   :  { %172 = vmatmul.mubr.f32.vlgmr.msra.gmra.mrb[0].mxu0 %v73_v24  ;;  %550 = vmatpush1.bf16.msra.mxu1 %v549_v30 }
  0x6e   :  { %177 = vmatprep.mubr.f32.mxu0 %v755_v0  ;;  %552 = vmatprep.subr.bf16.mxu1 %v551_v32 }
  0x6f   :  { %558 = vmatpush3.bf16.msra.mxu0 %v557_v41 }
  0x70   :  { %560 = vmatprep.subr.bf16.mxu0 %v559_v44 }
  0x71   :  { %178 = vmatmul.mubr.f32.gmra.mrb[2].mxu0 %v74_v31  ;;  %554 = vmatpush1.bf16.msra.mxu1 %v553_v35 }
  0x72   :  { %587 = vmatprep.subr.bf16.mxu1 %v555_v38 }
  0x73   :  { %562 = vmatpush3.bf16.msra.mxu0 %v561_v47 }
  0x74   :  { %281 = vmatmul.mubr.f32.vlgmr.msra.gmra.mrb[0].mxu1 %v73_v24 }
  0x75   :  { %286 = vmatprep.mubr.f32.mxu1 %v755_v0  ;;  %595 = vmatpush3.bf16.msra.mxu1 %v557_v41  ;;  %v345_v0 = vld [vmem:[#allocation8 + $0xa0] sm:$0xff] }
  0x76   :  { %588 = vmatprep.subr.bf16.mxu1 %v559_v44  ;;  %v563_v49 = vpack.c.bf16 %v346_v48, %v345_v0 }
  0x78   :  { %287 = vmatmul.mubr.f32.gmra.mrb[2].mxu1 %v74_v31  ;;  %564 = vmatprep.subr.bf16.mxu0 %v563_v49 }
  0x79   :  { %596 = vmatpush3.bf16.msra.mxu1 %v561_v47  ;;  %566 = vmatpush3.bf16.msra.mxu0 %v565_v52 }
  0x7a   :  { %589 = vmatprep.subr.bf16.mxu1 %v563_v49  ;;  %568 = vmatprep.subr.bf16.mxu0 %v567_v55 }
  0x7d   :  { %597 = vmatpush3.bf16.msra.mxu1 %v565_v52  ;;  %570 = vmatpush3.bf16.msra.mxu0 %v569_v58 }
  0x7e   :  { %590 = vmatprep.subr.bf16.mxu1 %v567_v55  ;;  %572 = vmatprep.subr.bf16.mxu0 %v571_v61 }
  0x81   :  { %598 = vmatpush3.bf16.msra.mxu1 %v569_v58  ;;  %574 = vmatpush3.bf16.msra.mxu0 %v573_v1 }
  0x82   :  { %591 = vmatprep.subr.bf16.mxu1 %v571_v61  ;;  %576 = vmatprep.subr.bf16.mxu0 %v575_v4 }
  0x85   :  { %599 = vmatpush3.bf16.msra.mxu1 %v573_v1  ;;  %578 = vmatpush3.bf16.msra.mxu0 %v577_v7 }
  0x86   :  { %592 = vmatprep.subr.bf16.mxu1 %v575_v4  ;;  %580 = vmatprep.subr.bf16.mxu0 %v579_v10 }
  0x89   :  { %600 = vmatpush3.bf16.msra.mxu1 %v577_v7  ;;  %582 = vmatpush3.bf16.msra.mxu0 %v581_v13 }
  0x8a   :  { %593 = vmatprep.subr.bf16.mxu1 %v579_v10  ;;  %584 = vmatprep.subr.bf16.mxu0 %v583_v16 }
  0x8d   :  { %601 = vmatpush3.bf16.msra.mxu1 %v581_v13  ;;  %586 = vmatpush3.bf16.msra.mxu0 %v585_v19 }
  0x8e   :  { %594 = vmatprep.subr.bf16.mxu1 %v583_v16 }
  0x91   :  { %602 = vmatpush3.bf16.msra.mxu1 %v585_v19 }
 0x140   :  { %v173_v20 = vpop.f32.mrb[0].mxu0 }
 0x141   :  { %v293_v21 = vsub.f32 0.0, %v173_v20  ;;  %v175_v22 = vpop.f32.mrb[1].mxu0 }
 0x142   :  { %v294_v23 = vsub.f32 0.0, %v175_v22 }
 0x143   :  { %v297_v24 = vmul.f32 1.442695, %v293_v21 }
 0x144   :  { %v299_v25 = vmul.f32 1.442695, %v294_v23  ;;  %v179_v26 = vpop.f32.mrb[2].mxu0 }
 0x145   :  { %613 = vpow2.f32 %v297_v24  ;;  %v295_v27 = vsub.f32 0.0, %v179_v26  ;;  %v181_v28 = vpop.f32.mrb[3].mxu0 }
 0x146   :  { %615 = vpow2.f32 %v299_v25  ;;  %v296_v29 = vsub.f32 0.0, %v181_v28 }
 0x147   :  { %v301_v30 = vmul.f32 1.442695, %v295_v27  ;;  %v282_v32 = vpop.f32.mrb[0].mxu1 }
 0x148   :  { %v303_v31 = vmul.f32 1.442695, %v296_v29  ;;  %v284_v33 = vpop.f32.mrb[1].mxu1 }
 0x149   :  { %617 = vpow2.f32 %v301_v30 }
 0x14a   :  { %619 = vpow2.f32 %v303_v31 }
 0x14b   :  { %v288_v35 = vpop.f32.mrb[2].mxu1 }
 0x14c   :  { %v290_v38 = vpop.f32.mrb[3].mxu1 }
 0x14f   :  { %v614_v34 = vpop.eup %613 }
 0x150   :  { %v616_v36 = vpop.eup %615  ;;  %v305_v37 = vadd.f32 1.0, %v614_v34 }
 0x151   :  { %v306_v39 = vadd.f32 1.0, %v616_v36 }
 0x152   :  { %621 = vrcp.f32 %v305_v37 }
 0x153   :  { %v618_v40 = vpop.eup %617  ;;  %623 = vrcp.f32 %v306_v39 }
 0x154   :  { %v620_v41 = vpop.eup %619  ;;  %v307_v42 = vadd.f32 1.0, %v618_v40 }
 0x155   :  { %v308_v43 = vadd.f32 1.0, %v620_v41 }
 0x156   :  { %625 = vrcp.f32 %v307_v42 }
 0x157   :  { %627 = vrcp.f32 %v308_v43 }
 0x15c   :  { %v622_v44 = vpop.eup %621 }
 0x15d   :  { %v624_v45 = vpop.eup %623  ;;  %v317_v46 = vmul.f32 %v622_v44, %v173_v20 }
 0x15e   :  { %v318_v47 = vmul.f32 %v624_v45, %v175_v22 }
 0x15f   :  { %v321_v0 = vmul.f32 %v317_v46, %v282_v32 }
 0x160   :  { %v626_v48 = vpop.eup %625  ;;  %v322_v49 = vmul.f32 %v318_v47, %v284_v33 }
 0x161   :  { %v628_v50 = vpop.eup %627  ;;  %v319_v51 = vmul.f32 %v626_v48, %v179_v26 }
 0x162   :  { %v320_v52 = vmul.f32 %v628_v50, %v181_v28  ;;  %421 = vmatprep.mubr.f32.mxu0 %v322_v49 }
 0x163   :  { %v323_v53 = vmul.f32 %v319_v51, %v288_v35  ;;  %422 = vmatmul.mubr.f32.vlgmr.msra.gmra.mrb[4].mxu0 %v321_v0 }
 0x164   :  { %v324_v54 = vmul.f32 %v320_v52, %v290_v38 }
 0x166   :  { %426 = vmatprep.mubr.f32.mxu1 %v324_v54 }
 0x167   :  { %427 = vmatmul.mubr.f32.vlgmr.msra.gmra.mrb[4].mxu1 %v323_v53 }
 0x236   :  { %v485_v55 = vpop.f32.mrb[4].mxu0 }
 0x237   :  { %v486_v56 = vpop.f32.mrb[5].mxu0 }
 0x238   :  { %v487_v57 = vadd.f32 %v486_v56, %v485_v55 }
 0x23a   :  { %432 = vst [vmem:[#allocation10] sm:$0xff] %v487_v57  ;;  %v488_v58 = vpop.f32.mrb[4].mxu1 }
 0x23b   :  { %v489_v59 = vpop.f32.mrb[5].mxu1 }
 0x23c   :  { %v490_v60 = vadd.f32 %v489_v59, %v488_v58 }
 0x23e   :  { %433 = vst [vmem:[#allocation10 + $0x8] sm:$0xff] %v490_v60 }
 0x23f   :  { %728 = shalt.err (!%p725_p8)
}
 0x240   :  { %s729_s17 = scalar_lea.hbm %s872_s4, 256 }
 0x241   :  { %p730_p9 = scmp.ne.s32.totalorder %s872_s4, %s729_s17  ;;  %p733_p10 = scmp.lt.u32.totalorder %s729_s17, %s872_s4 }
 0x243   :  { %p735_p11 = pnand %p733_p10, %p730_p9 }
 0x245   :  { %738 = shalt.err (!%p735_p11)
}
 0x246   :  { %445 = dma.vmem_to_hbm [thread:$0]  %s440_s26, 256, %s872_s4, [#allocation4], %s751_s1, %s751_s1, %s752_s13  }
 0x247   :  { %745 = dma.done.wait [#allocation4], 256  }
 0x248   :  { %746 = vsyncadd [#allocation4], 4294967040 }
 0x249   :  { %449 = vsyncpa [#allocation3], 1 }
 0x24a   :  { %450 = vsyncpa [#allocation6], 1 }
 0x24b   :  { %451 = vsyncpa [#allocation9], 1 }
 0x24c   :  { %452 = vsyncpa [#allocation4], 1 }

</bundles_post_ra>
